<compile_context>
chip_gen: v7x
topology: tpu7x:2x2x1
jax: 0.10.0
libtpu: 0.0.40
codegen_flags: <defaults>
</compile_context>

<pallas_src>
import jax
import jax.numpy as jnp
import numpy as np
from jax import lax
from jax.experimental import pallas as pl
from jax.experimental.pallas import tpu as pltpu


def _round_up(x, m):
  return ((x + m - 1) // m) * m


# ----------------------------------------------------------------------------
# Pallas kernel: 3-layer GRU step + general attention + context + log-softmax.
# ----------------------------------------------------------------------------
def _decoder_kernel(data_ref, w_ref, wout_ref, out_ref):
  W3 = data_ref.shape[1]        # 3H
  H = W3 // 3
  H2 = 2 * H
  S = data_ref.shape[0] - 10    # rows: S enc + 1 x + 3 h_prev + 6 bias
  O = wout_ref.shape[1]

  def dot(a, b):
    return jnp.dot(a, b, preferred_element_type=jnp.float32)

  # --- data slab layout (width 3H, only leading lanes used per row) ---------
  #   rows [0, S)      : encoder outputs             (lanes 0:H)
  #   row  S           : [embedding ; last_context]  (lanes 0:2H)
  #   rows [S+1, S+4)  : previous hidden h0,h1,h2    (lanes 0:H)
  #   rows [S+4, S+10) : per-layer bias rows (full 3H width), in order
  #                      (b_ih_r+b_hh_r, b_ih_z+b_hh_z, b_ih_n) then
  #                      (0,             0,             b_hh_n)
  enc = data_ref[0:S, 0:H]                    # (S, H)
  x0 = data_ref[S:S + 1, 0:H2]                # (1, 2H)

  def bias(i):
    return data_ref[S + 4 + i:S + 5 + i, :]   # (1, 3H)

  # --- weight slab layout (width 3H) ----------------------------------------
  #   rows [0, 2H)  : W_ih layer 0, transposed (2H, 3H), gate order r,z,n
  #   rows [2H, 3H) : W_ih layer 1, transposed
  #   rows [3H, 4H) : W_ih layer 2, transposed
  #   rows [4H, 7H) : W_hh layers 0..2, transposed
  #   rows [7H, 8H) : W_attn (H, H) in lanes 0:H  (u = h3 @ W_attn)
  def gru_layer(x, h, w_ih, w_hh, b_i3, b_h3):
    gi = dot(x, w_ih) + b_i3                  # (1, 3H) single MXU push
    gh = dot(h, w_hh) + b_h3                  # (1, 3H) single MXU push
    rz = jax.nn.sigmoid(gi[:, 0:H2] + gh[:, 0:H2])
    r = rz[:, 0:H]
    z = rz[:, H:H2]
    n = jnp.tanh(gi[:, H2:W3] + r * gh[:, H2:W3])
    return (1.0 - z) * n + z * h

  h1 = gru_layer(x0, data_ref[S + 1:S + 2, 0:H],
                 w_ref[0:H2, :], w_ref[4 * H:5 * H, :], bias(0), bias(1))
  h2 = gru_layer(h1, data_ref[S + 2:S + 3, 0:H],
                 w_ref[H2:3 * H, :], w_ref[5 * H:6 * H, :], bias(2), bias(3))
  h3 = gru_layer(h2, data_ref[S + 3:S + 4, 0:H],
                 w_ref[3 * H:4 * H, :], w_ref[6 * H:7 * H, :], bias(4), bias(5))

  # --- "general" attention (b_attn term dropped: softmax-invariant) ---------
  u = dot(h3, w_ref[7 * H:8 * H, 0:H])                           # (1, H)
  scores = lax.dot_general(u, enc, (((1,), (1,)), ((), ())),
                           preferred_element_type=jnp.float32)   # (1, S)
  m = jnp.max(scores, axis=1, keepdims=True)
  e = jnp.exp(scores - m)
  attn = e / jnp.sum(e, axis=1, keepdims=True)                   # exact divide
  context = dot(attn, enc)                                       # (1, H)

  # --- output projection + log_softmax (split-weight, no concat) ------------
  logits = (dot(h3, wout_ref[0:H, :]) + dot(context, wout_ref[H:H2, :])
            + wout_ref[H2:H2 + 1, :])                            # (1, O)
  lmax = jnp.max(logits, axis=1, keepdims=True)
  shifted = logits - lmax
  logp = shifted - jnp.log(jnp.sum(jnp.exp(shifted), axis=1, keepdims=True))

  # --- single lane-dense output slab (one writeback DMA) --------------------
  out_ref[...] = jnp.zeros_like(out_ref)
  out_ref[0:1, 0:O] = logp
  out_ref[1:2, 0:H] = h1
  out_ref[2:3, 0:H] = h2
  out_ref[3:4, 0:H] = h3
  out_ref[4:5, 0:H] = context
  out_ref[5:6, 0:S] = attn


# ----------------------------------------------------------------------------
# Parameter construction (deterministic, PyTorch-like layout) + packing.
# ----------------------------------------------------------------------------
def init_params(key, hidden_size, output_size, n_layers=3):
  H, O = hidden_size, output_size
  ks = jax.random.split(key, 1 + 4 * n_layers + 4)
  bh = 1.0 / float(H) ** 0.5
  bo = 1.0 / float(2 * H) ** 0.5

  p = {"embedding": jax.random.normal(ks[0], (O, H), jnp.float32)}
  gru = []
  i = 1
  for layer in range(n_layers):
    in_dim = 2 * H if layer == 0 else H
    w_ih = jax.random.uniform(ks[i], (3 * H, in_dim), jnp.float32, -bh, bh); i += 1
    w_hh = jax.random.uniform(ks[i], (3 * H, H), jnp.float32, -bh, bh); i += 1
    b_ih = jax.random.uniform(ks[i], (3 * H,), jnp.float32, -bh, bh); i += 1
    b_hh = jax.random.uniform(ks[i], (3 * H,), jnp.float32, -bh, bh); i += 1
    gru.append({"w_ih": w_ih, "w_hh": w_hh, "b_ih": b_ih, "b_hh": b_hh})
  p["gru"] = gru
  p["w_attn"] = jax.random.uniform(ks[i], (H, H), jnp.float32, -bh, bh); i += 1
  p["b_attn"] = jax.random.uniform(ks[i], (H,), jnp.float32, -bh, bh); i += 1
  p["w_out"] = jax.random.uniform(ks[i], (O, 2 * H), jnp.float32, -bo, bo); i += 1
  p["b_out"] = jax.random.uniform(ks[i], (O,), jnp.float32, -bo, bo); i += 1
  return p


def pack_params(p, hidden_size, n_layers=3):
  """Pack PyTorch-layout params into the slabs the kernel uses."""
  assert n_layers == 3, "kernel is specialized for n_layers=3"
  H = hidden_size
  W3 = 3 * H

  # Weight slab (8H, 3H): per-layer W_ih^T / W_hh^T (gate columns r,z,n) and
  # W_attn (un-transposed, lanes 0:H).
  wrows = [p["gru"][0]["w_ih"].T,                 # (2H, 3H)
           p["gru"][1]["w_ih"].T,                 # (H, 3H)
           p["gru"][2]["w_ih"].T,                 # (H, 3H)
           p["gru"][0]["w_hh"].T,                 # (H, 3H)
           p["gru"][1]["w_hh"].T,
           p["gru"][2]["w_hh"].T,
           jnp.pad(p["w_attn"], ((0, 0), (0, W3 - H)))]
  w_slab = jnp.concatenate(wrows, axis=0)         # (8H, 3H)

  # Fused gate-bias rows (6, 3H), per layer: (r+r, z+z, n_ih) and (0, 0, n_hh).
  brows = []
  zeros2h = jnp.zeros((2 * H,), jnp.float32)
  for layer in range(3):
    b_ih = p["gru"][layer]["b_ih"]
    b_hh = p["gru"][layer]["b_hh"]
    brows.append(jnp.concatenate([b_ih[0:H] + b_hh[0:H],
                                  b_ih[H:2 * H] + b_hh[H:2 * H],
                                  b_ih[2 * H:3 * H]]))
    brows.append(jnp.concatenate([zeros2h, b_hh[2 * H:3 * H]]))
  bias_slab = jnp.stack(brows, axis=0)            # (6, 3H)
  # NOTE: b_attn intentionally dropped — it adds the same constant to every
  # attention score and is annihilated by the softmax.

  out_slab = jnp.concatenate(
      [p["w_out"].T, p["b_out"].reshape(1, -1)], axis=0)  # (2H+1, O)

  return {"embedding": p["embedding"], "w_slab": w_slab,
          "bias_slab": bias_slab, "out_slab": out_slab}


# ----------------------------------------------------------------------------
# Wrapper: embedding gather + slab packing + pallas_call + output un-packing.
# ----------------------------------------------------------------------------
def attention_decoder_forward(word_input, last_context, last_hidden,
                              encoder_outputs, packed):
  """Mirrors AttentionDecoder.forward (single step, batch = 1)."""
  H = last_context.shape[-1]
  n_layers = last_hidden.shape[0]
  S = encoder_outputs.shape[0]
  O = packed["out_slab"].shape[1]
  W3 = 3 * H
  assert n_layers == 3

  emb = packed["embedding"][word_input].reshape(1, H)
  x0 = jnp.concatenate([emb, last_context.reshape(1, H)], axis=1)   # (1, 2H)

  def lane_pad(a):
    return jnp.pad(a, ((0, 0), (0, W3 - a.shape[1])))

  data = jnp.concatenate([
      lane_pad(encoder_outputs.reshape(S, H)),      # rows [0, S)
      lane_pad(x0),                                 # row  S
      lane_pad(last_hidden.reshape(n_layers, H)),   # rows [S+1, S+4)
      packed["bias_slab"],                          # rows [S+4, S+10)
  ], axis=0)                                        # (S + 10, 3H)

  out_w = _round_up(max(O, H, S), 128)
  out = pl.pallas_call(
      _decoder_kernel,
      out_shape=jax.ShapeDtypeStruct((8, out_w), jnp.float32),
      in_specs=[pl.BlockSpec(memory_space=pltpu.MemorySpace.VMEM)] * 3,
      out_specs=pl.BlockSpec(memory_space=pltpu.MemorySpace.VMEM),
  )(data, packed["w_slab"], packed["out_slab"])

  logp = out[0:1, 0:O]
  hidden = out[1:1 + n_layers, 0:H].reshape(n_layers, 1, H)
  context = out[1 + n_layers:2 + n_layers, 0:H]
  attn = out[2 + n_layers:3 + n_layers, 0:S].reshape(1, 1, S)
  return logp, context, hidden, attn


# ----------------------------------------------------------------------------
# Pure-JAX reference (same math, PyTorch layout) for correctness checking.
# ----------------------------------------------------------------------------
def _reference(word_input, last_context, last_hidden, encoder_outputs, p):
  H = last_context.shape[-1]
  with jax.default_matmul_precision("highest"):
    emb = p["embedding"][word_input].reshape(1, H)
    x = jnp.concatenate([emb, last_context], axis=1)
    h_prev = last_hidden.reshape(-1, H)
    hs = []
    inp = x
    for layer in range(3):
      g = p["gru"][layer]
      h = h_prev[layer:layer + 1]
      gi = jnp.dot(inp, g["w_ih"].T) + g["b_ih"]
      gh = jnp.dot(h, g["w_hh"].T) + g["b_hh"]
      r = jax.nn.sigmoid(gi[:, :H] + gh[:, :H])
      z = jax.nn.sigmoid(gi[:, H:2 * H] + gh[:, H:2 * H])
      n = jnp.tanh(gi[:, 2 * H:] + r * gh[:, 2 * H:])
      hn = (1.0 - z) * n + z * h
      hs.append(hn)
      inp = hn
    h3 = hs[-1]
    enc = encoder_outputs.reshape(-1, H)
    energy = jnp.dot(enc, p["w_attn"].T) + p["b_attn"]          # (S, H)
    scores = jnp.dot(energy, h3.T)[:, 0]                        # (S,)
    attn = jax.nn.softmax(scores)
    context = jnp.sum(attn[:, None] * enc, axis=0, keepdims=True)
    logits = (jnp.dot(jnp.concatenate([h3, context], axis=1), p["w_out"].T)
              + p["b_out"])
    logp = jax.nn.log_softmax(logits, axis=-1)
  return (logp, context, jnp.stack(hs, axis=0).reshape(3, 1, H),
          attn.reshape(1, 1, -1))


if __name__ == "__main__":
  HIDDEN = 32
  OUTPUT = 16
  SEQ = 8
  N_LAYERS = 3

  root = jax.random.PRNGKey(0)
  kp, k1, k2, k3 = jax.random.split(root, 4)
  params = init_params(kp, HIDDEN, OUTPUT, N_LAYERS)
  packed = pack_params(params, HIDDEN, N_LAYERS)

  word_input = jnp.int32(3)
  last_context = jax.random.normal(k1, (1, HIDDEN), jnp.float32)
  last_hidden = jax.random.normal(k2, (N_LAYERS, 1, HIDDEN), jnp.float32)
  encoder_outputs = jax.random.normal(k3, (SEQ, 1, HIDDEN), jnp.float32)

  fwd = jax.jit(attention_decoder_forward)
  out = fwd(word_input, last_context, last_hidden, encoder_outputs, packed)
  output, context, hidden, attn_weights = jax.block_until_ready(out)

  assert output.shape == (1, OUTPUT)
  assert context.shape == (1, HIDDEN)
  assert hidden.shape == (N_LAYERS, 1, HIDDEN)
  assert attn_weights.shape == (1, 1, SEQ)

  # Correctness check against a pure-JAX (highest-precision) reference.
  # Exact softmax divide lets the tolerance come down from 5e-2; remaining
  # slack covers default MXU matmul precision inside the kernel.
  r_out, r_ctx, r_hid, r_attn = _reference(
      word_input, last_context, last_hidden, encoder_outputs, params)
  np.testing.assert_allclose(np.asarray(output), np.asarray(r_out),
                             atol=2e-2, rtol=2e-2)
  np.testing.assert_allclose(np.asarray(context), np.asarray(r_ctx),
                             atol=2e-2, rtol=2e-2)
  np.testing.assert_allclose(np.asarray(hidden), np.asarray(r_hid),
                             atol=2e-2, rtol=2e-2)
  np.testing.assert_allclose(np.asarray(attn_weights), np.asarray(r_attn),
                             atol=2e-2, rtol=2e-2)

  print("KERNEL_OK")
</pallas_src>

<mosaic_0001>
module attributes {stable_mosaic.version = 11 : i64} {
  func.func @_decoder_kernel(%arg0: memref<18x96xf32, #tpu.memory_space<vmem>>, %arg1: memref<256x96xf32, #tpu.memory_space<vmem>>, %arg2: memref<65x16xf32, #tpu.memory_space<vmem>>, %arg3: memref<8x128xf32, #tpu.memory_space<vmem>>) attributes {dimension_semantics = [], scalar_prefetch = 0 : i64, scratch_operands = 0 : i64, tpu.core_type = #tpu.core_type<tc>} {
    %c0 = arith.constant 0 : index
    %c0_0 = arith.constant 0 : index
    %0 = vector.load %arg0[%c0, %c0_0] : memref<18x96xf32, #tpu.memory_space<vmem>>, vector<8x32xf32>
    %c8 = arith.constant 8 : index
    %c0_1 = arith.constant 0 : index
    %1 = vector.load %arg0[%c8, %c0_1] : memref<18x96xf32, #tpu.memory_space<vmem>>, vector<1x64xf32>
    %c9 = arith.constant 9 : index
    %c0_2 = arith.constant 0 : index
    %2 = vector.load %arg0[%c9, %c0_2] : memref<18x96xf32, #tpu.memory_space<vmem>>, vector<1x32xf32>
    %c0_3 = arith.constant 0 : index
    %c0_4 = arith.constant 0 : index
    %3 = vector.load %arg1[%c0_3, %c0_4] : memref<256x96xf32, #tpu.memory_space<vmem>>, vector<64x96xf32>
    %c128 = arith.constant 128 : index
    %c0_5 = arith.constant 0 : index
    %4 = vector.load %arg1[%c128, %c0_5] : memref<256x96xf32, #tpu.memory_space<vmem>>, vector<32x96xf32>
    %c12 = arith.constant 12 : index
    %c0_6 = arith.constant 0 : index
    %5 = vector.load %arg0[%c12, %c0_6] : memref<18x96xf32, #tpu.memory_space<vmem>>, vector<1x96xf32>
    %c13 = arith.constant 13 : index
    %c0_7 = arith.constant 0 : index
    %6 = vector.load %arg0[%c13, %c0_7] : memref<18x96xf32, #tpu.memory_space<vmem>>, vector<1x96xf32>
    %cst = arith.constant dense<0.000000e+00> : vector<1x96xf32>
    %7 = tpu.matmul %1, %3, %cst {dimension_numbers = #tpu.dot_dimension_numbers<[1], [0], [0], [1], [0, 0, 1, 1], [], []>} : vector<1x64xf32>, vector<64x96xf32>, vector<1x96xf32> -> vector<1x96xf32>
    %8 = arith.addf %7, %5 : vector<1x96xf32>
    %cst_8 = arith.constant dense<0.000000e+00> : vector<1x96xf32>
    %9 = tpu.matmul %2, %4, %cst_8 {dimension_numbers = #tpu.dot_dimension_numbers<[1], [0], [0], [1], [0, 0, 1, 1], [], []>} : vector<1x32xf32>, vector<32x96xf32>, vector<1x96xf32> -> vector<1x96xf32>
    %10 = arith.addf %9, %6 : vector<1x96xf32>
    %11 = vector.extract_strided_slice %8 {offsets = [0, 0], sizes = [1, 64], strides = [1, 1]} : vector<1x96xf32> to vector<1x64xf32>
    %12 = vector.extract_strided_slice %10 {offsets = [0, 0], sizes = [1, 64], strides = [1, 1]} : vector<1x96xf32> to vector<1x64xf32>
    %13 = arith.addf %11, %12 : vector<1x64xf32>
    %14 = arith.negf %13 : vector<1x64xf32>
    %15 = math.exp %14 : vector<1x64xf32>
    %cst_9 = arith.constant 1.000000e+00 : f32
    %16 = vector.broadcast %cst_9 : f32 to vector<1x64xf32>
    %17 = arith.addf %16, %15 : vector<1x64xf32>
    %18 = arith.divf %16, %17 : vector<1x64xf32>
    %19 = vector.extract_strided_slice %18 {offsets = [0, 0], sizes = [1, 32], strides = [1, 1]} : vector<1x64xf32> to vector<1x32xf32>
    %20 = vector.extract_strided_slice %18 {offsets = [0, 32], sizes = [1, 32], strides = [1, 1]} : vector<1x64xf32> to vector<1x32xf32>
    %21 = vector.extract_strided_slice %8 {offsets = [0, 64], sizes = [1, 32], strides = [1, 1]} : vector<1x96xf32> to vector<1x32xf32>
    %22 = vector.extract_strided_slice %10 {offsets = [0, 64], sizes = [1, 32], strides = [1, 1]} : vector<1x96xf32> to vector<1x32xf32>
    %23 = arith.mulf %19, %22 : vector<1x32xf32>
    %24 = arith.addf %21, %23 : vector<1x32xf32>
    %25 = math.tanh %24 : vector<1x32xf32>
    %cst_10 = arith.constant 1.000000e+00 : f32
    %26 = vector.broadcast %cst_10 : f32 to vector<1x32xf32>
    %27 = arith.subf %26, %20 : vector<1x32xf32>
    %28 = arith.mulf %27, %25 : vector<1x32xf32>
    %29 = arith.mulf %20, %2 : vector<1x32xf32>
    %30 = arith.addf %28, %29 : vector<1x32xf32>
    %c10 = arith.constant 10 : index
    %c0_11 = arith.constant 0 : index
    %31 = vector.load %arg0[%c10, %c0_11] : memref<18x96xf32, #tpu.memory_space<vmem>>, vector<1x32xf32>
    %c64 = arith.constant 64 : index
    %c0_12 = arith.constant 0 : index
    %32 = vector.load %arg1[%c64, %c0_12] : memref<256x96xf32, #tpu.memory_space<vmem>>, vector<32x96xf32>
    %c160 = arith.constant 160 : index
    %c0_13 = arith.constant 0 : index
    %33 = vector.load %arg1[%c160, %c0_13] : memref<256x96xf32, #tpu.memory_space<vmem>>, vector<32x96xf32>
    %c14 = arith.constant 14 : index
    %c0_14 = arith.constant 0 : index
    %34 = vector.load %arg0[%c14, %c0_14] : memref<18x96xf32, #tpu.memory_space<vmem>>, vector<1x96xf32>
    %c15 = arith.constant 15 : index
    %c0_15 = arith.constant 0 : index
    %35 = vector.load %arg0[%c15, %c0_15] : memref<18x96xf32, #tpu.memory_space<vmem>>, vector<1x96xf32>
    %cst_16 = arith.constant dense<0.000000e+00> : vector<1x96xf32>
    %36 = tpu.matmul %30, %32, %cst_16 {dimension_numbers = #tpu.dot_dimension_numbers<[1], [0], [0], [1], [0, 0, 1, 1], [], []>} : vector<1x32xf32>, vector<32x96xf32>, vector<1x96xf32> -> vector<1x96xf32>
    %37 = arith.addf %36, %34 : vector<1x96xf32>
    %cst_17 = arith.constant dense<0.000000e+00> : vector<1x96xf32>
    %38 = tpu.matmul %31, %33, %cst_17 {dimension_numbers = #tpu.dot_dimension_numbers<[1], [0], [0], [1], [0, 0, 1, 1], [], []>} : vector<1x32xf32>, vector<32x96xf32>, vector<1x96xf32> -> vector<1x96xf32>
    %39 = arith.addf %38, %35 : vector<1x96xf32>
    %40 = vector.extract_strided_slice %37 {offsets = [0, 0], sizes = [1, 64], strides = [1, 1]} : vector<1x96xf32> to vector<1x64xf32>
    %41 = vector.extract_strided_slice %39 {offsets = [0, 0], sizes = [1, 64], strides = [1, 1]} : vector<1x96xf32> to vector<1x64xf32>
    %42 = arith.addf %40, %41 : vector<1x64xf32>
    %43 = arith.negf %42 : vector<1x64xf32>
    %44 = math.exp %43 : vector<1x64xf32>
    %cst_18 = arith.constant 1.000000e+00 : f32
    %45 = vector.broadcast %cst_18 : f32 to vector<1x64xf32>
    %46 = arith.addf %45, %44 : vector<1x64xf32>
    %47 = arith.divf %45, %46 : vector<1x64xf32>
    %48 = vector.extract_strided_slice %47 {offsets = [0, 0], sizes = [1, 32], strides = [1, 1]} : vector<1x64xf32> to vector<1x32xf32>
    %49 = vector.extract_strided_slice %47 {offsets = [0, 32], sizes = [1, 32], strides = [1, 1]} : vector<1x64xf32> to vector<1x32xf32>
    %50 = vector.extract_strided_slice %37 {offsets = [0, 64], sizes = [1, 32], strides = [1, 1]} : vector<1x96xf32> to vector<1x32xf32>
    %51 = vector.extract_strided_slice %39 {offsets = [0, 64], sizes = [1, 32], strides = [1, 1]} : vector<1x96xf32> to vector<1x32xf32>
    %52 = arith.mulf %48, %51 : vector<1x32xf32>
    %53 = arith.addf %50, %52 : vector<1x32xf32>
    %54 = math.tanh %53 : vector<1x32xf32>
    %cst_19 = arith.constant 1.000000e+00 : f32
    %55 = vector.broadcast %cst_19 : f32 to vector<1x32xf32>
    %56 = arith.subf %55, %49 : vector<1x32xf32>
    %57 = arith.mulf %56, %54 : vector<1x32xf32>
    %58 = arith.mulf %49, %31 : vector<1x32xf32>
    %59 = arith.addf %57, %58 : vector<1x32xf32>
    %c11 = arith.constant 11 : index
    %c0_20 = arith.constant 0 : index
    %60 = vector.load %arg0[%c11, %c0_20] : memref<18x96xf32, #tpu.memory_space<vmem>>, vector<1x32xf32>
    %c96 = arith.constant 96 : index
    %c0_21 = arith.constant 0 : index
    %61 = vector.load %arg1[%c96, %c0_21] : memref<256x96xf32, #tpu.memory_space<vmem>>, vector<32x96xf32>
    %c192 = arith.constant 192 : index
    %c0_22 = arith.constant 0 : index
    %62 = vector.load %arg1[%c192, %c0_22] : memref<256x96xf32, #tpu.memory_space<vmem>>, vector<32x96xf32>
    %c16 = arith.constant 16 : index
    %c0_23 = arith.constant 0 : index
    %63 = vector.load %arg0[%c16, %c0_23] : memref<18x96xf32, #tpu.memory_space<vmem>>, vector<1x96xf32>
    %c17 = arith.constant 17 : index
    %c0_24 = arith.constant 0 : index
    %64 = vector.load %arg0[%c17, %c0_24] : memref<18x96xf32, #tpu.memory_space<vmem>>, vector<1x96xf32>
    %cst_25 = arith.constant dense<0.000000e+00> : vector<1x96xf32>
    %65 = tpu.matmul %59, %61, %cst_25 {dimension_numbers = #tpu.dot_dimension_numbers<[1], [0], [0], [1], [0, 0, 1, 1], [], []>} : vector<1x32xf32>, vector<32x96xf32>, vector<1x96xf32> -> vector<1x96xf32>
    %66 = arith.addf %65, %63 : vector<1x96xf32>
    %cst_26 = arith.constant dense<0.000000e+00> : vector<1x96xf32>
    %67 = tpu.matmul %60, %62, %cst_26 {dimension_numbers = #tpu.dot_dimension_numbers<[1], [0], [0], [1], [0, 0, 1, 1], [], []>} : vector<1x32xf32>, vector<32x96xf32>, vector<1x96xf32> -> vector<1x96xf32>
    %68 = arith.addf %67, %64 : vector<1x96xf32>
    %69 = vector.extract_strided_slice %66 {offsets = [0, 0], sizes = [1, 64], strides = [1, 1]} : vector<1x96xf32> to vector<1x64xf32>
    %70 = vector.extract_strided_slice %68 {offsets = [0, 0], sizes = [1, 64], strides = [1, 1]} : vector<1x96xf32> to vector<1x64xf32>
    %71 = arith.addf %69, %70 : vector<1x64xf32>
    %72 = arith.negf %71 : vector<1x64xf32>
    %73 = math.exp %72 : vector<1x64xf32>
    %cst_27 = arith.constant 1.000000e+00 : f32
    %74 = vector.broadcast %cst_27 : f32 to vector<1x64xf32>
    %75 = arith.addf %74, %73 : vector<1x64xf32>
    %76 = arith.divf %74, %75 : vector<1x64xf32>
    %77 = vector.extract_strided_slice %76 {offsets = [0, 0], sizes = [1, 32], strides = [1, 1]} : vector<1x64xf32> to vector<1x32xf32>
    %78 = vector.extract_strided_slice %76 {offsets = [0, 32], sizes = [1, 32], strides = [1, 1]} : vector<1x64xf32> to vector<1x32xf32>
    %79 = vector.extract_strided_slice %66 {offsets = [0, 64], sizes = [1, 32], strides = [1, 1]} : vector<1x96xf32> to vector<1x32xf32>
    %80 = vector.extract_strided_slice %68 {offsets = [0, 64], sizes = [1, 32], strides = [1, 1]} : vector<1x96xf32> to vector<1x32xf32>
    %81 = arith.mulf %77, %80 : vector<1x32xf32>
    %82 = arith.addf %79, %81 : vector<1x32xf32>
    %83 = math.tanh %82 : vector<1x32xf32>
    %cst_28 = arith.constant 1.000000e+00 : f32
    %84 = vector.broadcast %cst_28 : f32 to vector<1x32xf32>
    %85 = arith.subf %84, %78 : vector<1x32xf32>
    %86 = arith.mulf %85, %83 : vector<1x32xf32>
    %87 = arith.mulf %78, %60 : vector<1x32xf32>
    %88 = arith.addf %86, %87 : vector<1x32xf32>
    %c224 = arith.constant 224 : index
    %c0_29 = arith.constant 0 : index
    %89 = vector.load %arg1[%c224, %c0_29] : memref<256x96xf32, #tpu.memory_space<vmem>>, vector<32x32xf32>
    %cst_30 = arith.constant dense<0.000000e+00> : vector<1x32xf32>
    %90 = tpu.matmul %88, %89, %cst_30 {dimension_numbers = #tpu.dot_dimension_numbers<[1], [0], [0], [1], [0, 0, 1, 1], [], []>} : vector<1x32xf32>, vector<32x32xf32>, vector<1x32xf32> -> vector<1x32xf32>
    %cst_31 = arith.constant dense<0.000000e+00> : vector<1x8xf32>
    %91 = tpu.matmul %90, %0, %cst_31 {dimension_numbers = #tpu.dot_dimension_numbers<[1], [1], [0], [0], [0, 0, 1, 0], [], []>} : vector<1x32xf32>, vector<8x32xf32>, vector<1x8xf32> -> vector<1x8xf32>
    %cst_32 = arith.constant dense<0xFF800000> : vector<1xf32>
    %92 = vector.multi_reduction <maximumf>, %91, %cst_32 [1] : vector<1x8xf32> to vector<1xf32>
    %93 = vector.shape_cast %92 : vector<1xf32> to vector<1x1xf32>
    %94 = vector.broadcast %93 : vector<1x1xf32> to vector<1x8xf32>
    %95 = arith.subf %91, %94 : vector<1x8xf32>
    %96 = math.exp %95 : vector<1x8xf32>
    %cst_33 = arith.constant dense<0.000000e+00> : vector<1xf32>
    %97 = vector.multi_reduction <add>, %96, %cst_33 [1] : vector<1x8xf32> to vector<1xf32>
    %98 = vector.shape_cast %97 : vector<1xf32> to vector<1x1xf32>
    %99 = vector.broadcast %98 : vector<1x1xf32> to vector<1x8xf32>
    %100 = arith.divf %96, %99 : vector<1x8xf32>
    %cst_34 = arith.constant dense<0.000000e+00> : vector<1x32xf32>
    %101 = tpu.matmul %100, %0, %cst_34 {dimension_numbers = #tpu.dot_dimension_numbers<[1], [0], [0], [1], [0, 0, 1, 1], [], []>} : vector<1x8xf32>, vector<8x32xf32>, vector<1x32xf32> -> vector<1x32xf32>
    %c0_35 = arith.constant 0 : index
    %c0_36 = arith.constant 0 : index
    %102 = vector.load %arg2[%c0_35, %c0_36] : memref<65x16xf32, #tpu.memory_space<vmem>>, vector<32x16xf32>
    %cst_37 = arith.constant dense<0.000000e+00> : vector<1x16xf32>
    %103 = tpu.matmul %88, %102, %cst_37 {dimension_numbers = #tpu.dot_dimension_numbers<[1], [0], [0], [1], [0, 0, 1, 1], [], []>} : vector<1x32xf32>, vector<32x16xf32>, vector<1x16xf32> -> vector<1x16xf32>
    %c32 = arith.constant 32 : index
    %c0_38 = arith.constant 0 : index
    %104 = vector.load %arg2[%c32, %c0_38] : memref<65x16xf32, #tpu.memory_space<vmem>>, vector<32x16xf32>
    %cst_39 = arith.constant dense<0.000000e+00> : vector<1x16xf32>
    %105 = tpu.matmul %101, %104, %cst_39 {dimension_numbers = #tpu.dot_dimension_numbers<[1], [0], [0], [1], [0, 0, 1, 1], [], []>} : vector<1x32xf32>, vector<32x16xf32>, vector<1x16xf32> -> vector<1x16xf32>
    %106 = arith.addf %103, %105 : vector<1x16xf32>
    %c64_40 = arith.constant 64 : index
    %c0_41 = arith.constant 0 : index
    %107 = vector.load %arg2[%c64_40, %c0_41] : memref<65x16xf32, #tpu.memory_space<vmem>>, vector<1x16xf32>
    %108 = arith.addf %106, %107 : vector<1x16xf32>
    %cst_42 = arith.constant dense<0xFF800000> : vector<1xf32>
    %109 = vector.multi_reduction <maximumf>, %108, %cst_42 [1] : vector<1x16xf32> to vector<1xf32>
    %110 = vector.shape_cast %109 : vector<1xf32> to vector<1x1xf32>
    %111 = vector.broadcast %110 : vector<1x1xf32> to vector<1x16xf32>
    %112 = arith.subf %108, %111 : vector<1x16xf32>
    %113 = math.exp %112 : vector<1x16xf32>
    %cst_43 = arith.constant dense<0.000000e+00> : vector<1xf32>
    %114 = vector.multi_reduction <add>, %113, %cst_43 [1] : vector<1x16xf32> to vector<1xf32>
    %115 = vector.shape_cast %114 : vector<1xf32> to vector<1x1xf32>
    %116 = math.log %115 : vector<1x1xf32>
    %117 = vector.broadcast %116 : vector<1x1xf32> to vector<1x16xf32>
    %118 = arith.subf %112, %117 : vector<1x16xf32>
    %cst_44 = arith.constant 0.000000e+00 : f32
    %119 = vector.broadcast %cst_44 : f32 to vector<8x128xf32>
    %c0_45 = arith.constant 0 : index
    %c0_46 = arith.constant 0 : index
    %120 = vector.load %arg3[%c0_45, %c0_46] : memref<8x128xf32, #tpu.memory_space<vmem>>, vector<8x128xf32>
    tpu.vector_store %arg3[%c0_45, %c0_46], %119 {strides = array<i32>} : memref<8x128xf32, #tpu.memory_space<vmem>>, vector<8x128xf32>,
    %c0_47 = arith.constant 0 : index
    %c0_48 = arith.constant 0 : index
    %121 = vector.load %arg3[%c0_47, %c0_48] : memref<8x128xf32, #tpu.memory_space<vmem>>, vector<1x16xf32>
    tpu.vector_store %arg3[%c0_47, %c0_48], %118 {strides = array<i32>} : memref<8x128xf32, #tpu.memory_space<vmem>>, vector<1x16xf32>,
    %c1 = arith.constant 1 : index
    %c0_49 = arith.constant 0 : index
    %122 = vector.load %arg3[%c1, %c0_49] : memref<8x128xf32, #tpu.memory_space<vmem>>, vector<1x32xf32>
    tpu.vector_store %arg3[%c1, %c0_49], %30 {strides = array<i32>} : memref<8x128xf32, #tpu.memory_space<vmem>>, vector<1x32xf32>,
    %c2 = arith.constant 2 : index
    %c0_50 = arith.constant 0 : index
    %123 = vector.load %arg3[%c2, %c0_50] : memref<8x128xf32, #tpu.memory_space<vmem>>, vector<1x32xf32>
    tpu.vector_store %arg3[%c2, %c0_50], %59 {strides = array<i32>} : memref<8x128xf32, #tpu.memory_space<vmem>>, vector<1x32xf32>,
    %c3 = arith.constant 3 : index
    %c0_51 = arith.constant 0 : index
    %124 = vector.load %arg3[%c3, %c0_51] : memref<8x128xf32, #tpu.memory_space<vmem>>, vector<1x32xf32>
    tpu.vector_store %arg3[%c3, %c0_51], %88 {strides = array<i32>} : memref<8x128xf32, #tpu.memory_space<vmem>>, vector<1x32xf32>,
    %c4 = arith.constant 4 : index
    %c0_52 = arith.constant 0 : index
    %125 = vector.load %arg3[%c4, %c0_52] : memref<8x128xf32, #tpu.memory_space<vmem>>, vector<1x32xf32>
    tpu.vector_store %arg3[%c4, %c0_52], %101 {strides = array<i32>} : memref<8x128xf32, #tpu.memory_space<vmem>>, vector<1x32xf32>,
    %c5 = arith.constant 5 : index
    %c0_53 = arith.constant 0 : index
    %126 = vector.load %arg3[%c5, %c0_53] : memref<8x128xf32, #tpu.memory_space<vmem>>, vector<1x8xf32>
    tpu.vector_store %arg3[%c5, %c0_53], %100 {strides = array<i32>} : memref<8x128xf32, #tpu.memory_space<vmem>>, vector<1x8xf32>,
    return
  }
}

</mosaic_0001>

<bundles_post_ra>
// kernel: attention_decoder_forward.1
= control target key start
LH: loop header
LB: loop body
LE: loop exit
PB: predicated region body
PF: predicated region fallthrough
CT: control target
= control target key end

     0   :  { %v1283_v0 = vmov 0.0|0.0   ;;  %vm1284_vm0 = vmmov 0   ;;  %v1285_v8 = vmov 0.0   ;;  %vm105_vm1 = vcmask 261120   ;;  %s1286_s15 = smov 64   ;;  %s1287_s9 = smov 96   ;;  %s1570_s1 = inlined_call_operand.vmem [shape: f32[256,96], index: 1, kind: input, shape index: {}]   ;;  %s1571_s0 = inlined_call_operand.vmem [shape: f32[18,96], index: 0, kind: input, shape index: {}]   ;;  %s1572_s3 = inlined_call_operand.vmem [shape: f32[8,128], index: 3, kind: output, shape index: {}]   ;;  %s1573_s2 = inlined_call_operand.vmem [shape: f32[65,16], index: 2, kind: input, shape index: {}]  }
   0x1   :  { %1191 = vmatprep.subr.bf16.mxu0 %v1283_v0  ;;  %1203 = vmatprep.subr.bf16.mxu1 %v1283_v0  ;;  %v17_v1 = vld [vmem:[%s1570_s1] sm:$0xff]  ;;  %v18_v2 = vld [vmem:[%s1570_s1 + $0x8] sm:$0xff]  ;;  %v19_v6 = vld [vmem:[%s1570_s1 + $0x10] sm:$0xff]  ;;  %vm31_vm2 = vcmask 523264   ;;  %991 = vst [vmem:[%s1572_s3] sm:$0xff] %v1285_v8  ;;  %s1288_s12 = smov 32   ;;  %vm994_vm3 = vcmask 253952  }
   0x2   :  { %v25_v3 = vld [vmem:[%s1570_s1 + $0x80] sm:$0xff]  ;;  %v1192_v4 = vpack.c.bf16 %v18_v2, %v17_v1  ;;  %v26_v5 = vld [vmem:[%s1570_s1 + $0x88] sm:$0xff]  ;;  %v20_v7 = vld [vmem:[%s1570_s1 + $0x18] sm:$0xff]  ;;  %1101 = vmatprep.mubr.msk.f32.mxu1 %vm1284_vm0, %v1285_v8  ;;  %1090 = vmatprep.mubr.msk.f32.mxu0 %vm1284_vm0, %v1285_v8  ;;  %vm739_vm4 = vcmask 57344   ;;  %vm751_vm5 = vcmask 64512   ;;  %vm978_vm6 = vcmask 122880  }
   0x3   :  { %v1204_v9 = vpack.c.bf16 %v26_v5, %v25_v3  ;;  %v27_v10 = vld [vmem:[%s1570_s1 + $0x90] sm:$0xff]  ;;  %v28_v11 = vld [vmem:[%s1570_s1 + $0x98] sm:$0xff]  ;;  %v1195_v12 = vpack.c.bf16 %v20_v7, %v19_v6  ;;  %v21_v14 = vld [vmem:[%s1570_s1 + $0x20] sm:$0xff] }
   0x4   :  { %1193 = vmatpush3.bf16.msra.mxu0 %v1192_v4  ;;  %v1207_v13 = vpack.c.bf16 %v28_v11, %v27_v10  ;;  %v22_v15 = vld [vmem:[%s1570_s1 + $0x28] sm:$0xff]  ;;  %v23_v18 = vld [vmem:[%s1570_s1 + $0x30] sm:$0xff]  ;;  %v24_v19 = vld [vmem:[%s1570_s1 + $0x38] sm:$0xff] }
   0x5   :  { %1205 = vmatpush3.bf16.msra.mxu1 %v1204_v9  ;;  %1194 = vmatprep.subr.bf16.mxu0 %v1283_v0  ;;  %v1198_v16 = vpack.c.bf16 %v22_v15, %v21_v14  ;;  %v1351_v17 = vld [vmem:[%s1571_s0 + $0x9] sm:$0x1]  ;;  %v1201_v20 = vpack.c.bf16 %v24_v19, %v23_v18  ;;  %v15_v21 = vld [vmem:[%s1571_s0 + $0x8] sm:$0x1]  ;;  %v30_v22 = vld [vmem:[%s1571_s0 + $0xd] sm:$0x1] }
   0x6   :  { %1206 = vmatprep.subr.bf16.mxu1 %v1283_v0  ;;  %v29_v28 = vld [vmem:[%s1571_s0 + $0xc] sm:$0x1]  ;;  %v213_v39 = vld [vmem:[%s1570_s1 + $0xa0] sm:$0xff]  ;;  %v215_v41 = vld [vmem:[%s1570_s1 + $0xb0] sm:$0xff] }
   0x7   :  { %v214_v40 = vld [vmem:[%s1570_s1 + $0xa8] sm:$0xff]  ;;  %v216_v43 = vld [vmem:[%s1570_s1 + $0xb8] sm:$0xff]  ;;  %v209_v44 = vld [vmem:[%s1570_s1 + $0x40] sm:$0xff] }
   0x8   :  { %1196 = vmatpush3.bf16.msra.mxu0 %v1195_v12  ;;  %v1216_v42 = vpack.c.bf16 %v214_v40, %v213_v39  ;;  %v210_v45 = vld [vmem:[%s1570_s1 + $0x48] sm:$0xff]  ;;  %v211_v46 = vld [vmem:[%s1570_s1 + $0x50] sm:$0xff]  ;;  %v212_v47 = vld [vmem:[%s1570_s1 + $0x58] sm:$0xff]  ;;  %v1219_v48 = vpack.c.bf16 %v216_v43, %v215_v41 }
   0x9   :  { %1208 = vmatpush3.bf16.msra.mxu1 %v1207_v13  ;;  %1197 = vmatprep.subr.bf16.mxu0 %v1283_v0  ;;  %v1210_v49 = vpack.c.bf16 %v210_v45, %v209_v44  ;;  %v1213_v51 = vpack.c.bf16 %v212_v47, %v211_v46  ;;  %v208_v52 = vld [vmem:[%s1571_s0 + $0xa] sm:$0x1]  ;;  %v218_v59 = vld [vmem:[%s1571_s0 + $0xf] sm:$0x1]  ;;  %v217_v1 = vld [vmem:[%s1571_s0 + $0xe] sm:$0x1] }
   0xa   :  { %1209 = vmatprep.subr.bf16.mxu1 %v1283_v0  ;;  %v401_v15 = vld [vmem:[%s1570_s1 + $0xc0] sm:$0xff]  ;;  %v404_v19 = vld [vmem:[%s1570_s1 + $0xd8] sm:$0xff]  ;;  %v405_v40 = vld [vmem:[%s1571_s0 + $0x10] sm:$0x1] }
   0xc   :  { %1102 = vmatmul.mubr.msk.f32.vlgmr.msra.gmra.mrb[0].mxu1 %vm105_vm1, %v1351_v17  ;;  %1199 = vmatpush3.bf16.msra.mxu0 %v1198_v16  ;;  %v402_v16 = vld [vmem:[%s1570_s1 + $0xc8] sm:$0xff] }
   0xd   :  { %1200 = vmatprep.subr.bf16.mxu0 %v1283_v0  ;;  %1112 = vmatprep.mubr.msk.f32.mxu1 %vm1284_vm0, %v1285_v8  ;;  %v1228_v18 = vpack.c.bf16 %v402_v16, %v401_v15  ;;  %v829_v16 = vld [vmem:[%s1573_s2 + $0x20] sm:$0xff] }
   0xe   :  { %1211 = vmatpush3.bf16.msra.mxu1 %v1210_v49 }
   0xf   :  { %1212 = vmatprep.subr.bf16.mxu1 %v1283_v0 }
  0x10   :  { %1202 = vmatpush3.bf16.msra.mxu0 %v1201_v20  ;;  %v397_v20 = vld [vmem:[%s1570_s1 + $0x60] sm:$0xff] }
  0x11   :  { %1215 = vmatprep.subr.bf16.mxu0 %v1283_v0 }
  0x12   :  { %1214 = vmatpush3.bf16.msra.mxu1 %v1213_v51 }
  0x13   :  { %1091 = vmatmul.mubr.msk.f32.vlgmr.msra.gmra.mrb[0].mxu0 %vm31_vm2, %v15_v21  ;;  %1221 = vmatprep.subr.bf16.mxu1 %v1283_v0  ;;  %v398_v21 = vld [vmem:[%s1570_s1 + $0x68] sm:$0xff] }
  0x14   :  { %1123 = vmatprep.mubr.msk.f32.mxu0 %vm1284_vm0, %v1285_v8  ;;  %1217 = vmatpush3.bf16.msra.mxu0 %v1216_v42 }
  0x15   :  { %1218 = vmatprep.subr.bf16.mxu0 %v1283_v0 }
  0x18   :  { %1220 = vmatpush3.bf16.msra.mxu0 %v1219_v48 }
  0x19   :  { %1227 = vmatprep.subr.bf16.mxu0 %v1283_v0 }
  0x1b   :  { %1124 = vmatmul.mubr.msk.f32.vlgmr.msra.gmra.mrb[2].mxu0 %vm105_vm1, %v208_v52 }
  0x1c   :  { %1145 = vmatprep.mubr.msk.f32.mxu0 %vm1284_vm0, %v1285_v8  ;;  %1229 = vmatpush3.bf16.msra.mxu0 %v1228_v18  ;;  %v831_v18 = vld [vmem:[%s1573_s2 + $0x30] sm:$0xff] }
  0x1d   :  { %1230 = vmatprep.subr.bf16.mxu0 %v1283_v0 }
  0xdf   :  { %v175_v23 = vpop.f32.mrb[0].mxu1 }
  0xe0   :  { %v176_v24 = vadd.f32 %v175_v23, %v30_v22  ;;  %v1103_v25 = vpop.f32.mrb[1].mxu1  ;;  %v399_v22 = vld [vmem:[%s1570_s1 + $0x70] sm:$0xff]  ;;  %v400_v23 = vld [vmem:[%s1570_s1 + $0x78] sm:$0xff] }
  0xe1   :  { %v1222_v25 = vpack.c.bf16 %v398_v21, %v397_v20  ;;  %v832_v20 = vld [vmem:[%s1573_s2 + $0x38] sm:$0xff] }
  0xe2   :  { %187 = vrot.lane.b32.xlu0 %v176_v24, %s1286_s15  ;;  %v1243_v21 = vpack.c.bf16 %v832_v20, %v831_v18 }
  0xe6   :  { %v101_v26 = vpop.f32.mrb[0].mxu0 }
  0xe7   :  { %v1092_v27 = vpop.f32.mrb[1].mxu0  ;;  %v102_v29 = vadd.f32 %v101_v26, %v29_v28  ;;  %v1225_v26 = vpack.c.bf16 %v400_v23, %v399_v22  ;;  %v825_v23 = vld [vmem:[%s1573_s2] sm:$0xff] }
  0xe8   :  { %v396_v27 = vld [vmem:[%s1571_s0 + $0xb] sm:$0x1] }
  0xe9   :  { %v179_v30 = vadd.f32 %v176_v24, %v102_v29 }
  0xeb   :  { %v1008_v31 = vmul.f32 -1.442695, %v179_v30 }
  0xed   :  { %1257 = vpow2.f32 %v1008_v31 }
  0xee   :  { %v363_v60 = vpop.f32.mrb[2].mxu0 }
  0xef   :  { %v364_v61 = vadd.f32 %v363_v60, %v218_v59  ;;  %v1125_v62 = vpop.f32.mrb[3].mxu0  ;;  %v14_v60 = vld [vmem:[%s1571_s0] sm:$0xff] }
  0xf7   :  { %v1258_v32 = vpop.eup %1257 }
  0xf8   :  { %v183_v33 = vadd.f32 1.0, %v1258_v32 }
  0xfa   :  { %1259 = vrcp.f32 %v183_v33 }
 0x104   :  { %v1260_v34 = vpop.eup %1259 }
 0x105   :  { %v197_v54 = vsub.f32 1.0, %v1260_v34 }
 0x154   :  { %v188_v35 = vpop.permute.xlu0 %187 }
 0x155   :  { %v190_v36 = vmul.f32 %v1260_v34, %v188_v35  ;;  %v406_v35 = vld [vmem:[%s1571_s0 + $0x11] sm:$0x1] }
 0x157   :  { %192 = vrot.lane.b32.xlu0 %v190_v36, %s1286_s15 }
 0x1c9   :  { %v193_v37 = vpop.permute.xlu0 %192 }
 0x1ca   :  { %v195_v38 = vadd.f32 %v193_v37, %v102_v29 }
 0x1cc   :  { %1261 = vtanh.f32 %v195_v38 }
 0x1d6   :  { %v1262_v50 = vpop.eup %1261 }
 0x1d7   :  { %199 = vrot.lane.b32.xlu1 %v1262_v50, %s1287_s9 }
 0x1db   :  { %203 = vrot.lane.b32.xlu1 %v1351_v17, %s1288_s12  ;;  %v403_v17 = vld [vmem:[%s1570_s1 + $0xd0] sm:$0xff] }
 0x1dc   :  { %v1231_v24 = vpack.c.bf16 %v404_v19, %v403_v17  ;;  %v830_v17 = vld [vmem:[%s1573_s2 + $0x28] sm:$0xff] }
 0x1dd   :  { %v1240_v19 = vpack.c.bf16 %v830_v17, %v829_v16 }
 0x1de   :  { %1232 = vmatpush3.bf16.msra.mxu0 %v1231_v24  ;;  %v826_v24 = vld [vmem:[%s1573_s2 + $0x8] sm:$0xff] }
 0x1df   :  { %375 = vrot.lane.b32.xlu1 %v364_v61, %s1286_s15  ;;  %1159 = vmatprep.subr.mxu0 %v1285_v8 }
 0x1e1   :  { %1146 = vmatmul.mubr.msk.f32.vlgmr.msra.gmra.mrb[4].mxu0 %vm105_vm1, %v396_v27 }
 0x1e2   :  { %1161 = vmatprep.mubr.msk.f32.mxu0 %vm1284_vm0, %v1285_v8 }
 0x1e7   :  { %1160 = vmatpush3.xpose.msk.msra.mxu0 %vm105_vm1, %v14_v60 }
 0x1e8   :  { %1239 = vmatprep.subr.bf16.mxu0 %v1283_v0 }
 0x249   :  { %v200_v53 = vpop.permute.xlu1 %199 }
 0x24a   :  { %v202_v56 = vmul.f32 %v200_v53, %v197_v54  ;;  %v584_v53 = vld [vmem:[%s1570_s1 + $0xe0] sm:$0xff]  ;;  %v585_v54 = vld [vmem:[%s1570_s1 + $0xe8] sm:$0xff] }
 0x24d   :  { %v204_v55 = vpop.permute.xlu1 %203 }
 0x24e   :  { %v206_v57 = vmul.f32 %v1260_v34, %v204_v55  ;;  %v586_v55 = vld [vmem:[%s1570_s1 + $0xf0] sm:$0xff] }
 0x250   :  { %v207_v58 = vadd.f32 %v206_v57, %v202_v56  ;;  %v1234_v56 = vpack.c.bf16 %v585_v54, %v584_v53  ;;  %v587_v57 = vld [vmem:[%s1570_s1 + $0xf8] sm:$0xff] }
 0x251   :  { %v376_v10 = vpop.permute.xlu1 %375 }
 0x252   :  { %220 = vrot.lane.b32.xlu0 %v207_v58, %s1287_s9  ;;  %v1237_v58 = vpack.c.bf16 %v587_v57, %v586_v55 }
 0x2b4   :  { %v551_v36 = vpop.f32.mrb[4].mxu0 }
 0x2b5   :  { %v552_v37 = vadd.f32 %v551_v36, %v406_v35  ;;  %v1147_v38 = vpop.f32.mrb[5].mxu0 }
 0x2c4   :  { %v221_v63 = vpop.permute.xlu0 %220 }
 0x2c5   :  { %995 = vst.msk [vmem:[%s1572_s3 + $0x1] sm:$0x1] %vm994_vm3, %v221_v63  ;;  %1113 = vmatmul.mubr.msk.f32.vlgmr.msra.gmra.mrb[2].mxu1 %vm105_vm1, %v221_v63 }
 0x2c6   :  { %1134 = vmatprep.mubr.msk.f32.mxu1 %vm1284_vm0, %v1285_v8  ;;  %1223 = vmatpush3.bf16.msra.mxu1 %v1222_v25 }
 0x2c7   :  { %1224 = vmatprep.subr.bf16.mxu1 %v1283_v0 }
 0x2ca   :  { %1226 = vmatpush3.bf16.msra.mxu1 %v1225_v26  ;;  %v1246_v26 = vpack.c.bf16 %v826_v24, %v825_v23 }
 0x2cb   :  { %1233 = vmatprep.subr.bf16.mxu1 %v1283_v0 }
 0x398   :  { %v290_v2 = vpop.f32.mrb[2].mxu1 }
 0x399   :  { %v291_v3 = vadd.f32 %v290_v2, %v217_v1  ;;  %v1114_v4 = vpop.f32.mrb[3].mxu1 }
 0x39b   :  { %v367_v5 = vadd.f32 %v364_v61, %v291_v3 }
 0x39d   :  { %v1011_v6 = vmul.f32 -1.442695, %v367_v5 }
 0x39f   :  { %1263 = vpow2.f32 %v1011_v6 }
 0x3a9   :  { %v1264_v7 = vpop.eup %1263 }
 0x3aa   :  { %v371_v9 = vadd.f32 1.0, %v1264_v7 }
 0x3ac   :  { %1265 = vrcp.f32 %v371_v9 }
 0x3b6   :  { %v1266_v11 = vpop.eup %1265 }
 0x3b7   :  { %v378_v12 = vmul.f32 %v1266_v11, %v376_v10  ;;  %v385_v30 = vsub.f32 1.0, %v1266_v11 }
 0x3b9   :  { %380 = vrot.lane.b32.xlu0 %v378_v12, %s1286_s15 }
 0x3bd   :  { %391 = vrot.lane.b32.xlu0 %v208_v52, %s1288_s12 }
 0x3c1   :  { %563 = vrot.lane.b32.xlu0 %v552_v37, %s1286_s15 }
 0x42b   :  { %v381_v13 = vpop.permute.xlu0 %380 }
 0x42c   :  { %v383_v14 = vadd.f32 %v381_v13, %v291_v3 }
 0x42e   :  { %1267 = vtanh.f32 %v383_v14 }
 0x42f   :  { %v392_v29 = vpop.permute.xlu0 %391 }
 0x430   :  { %v394_v32 = vmul.f32 %v1266_v11, %v392_v29  ;;  %v828_v29 = vld [vmem:[%s1573_s2 + $0x18] sm:$0xff] }
 0x433   :  { %v564_v48 = vpop.permute.xlu0 %563 }
 0x438   :  { %v1268_v28 = vpop.eup %1267 }
 0x439   :  { %387 = vrot.lane.b32.xlu1 %v1268_v28, %s1287_s9  ;;  %v827_v28 = vld [vmem:[%s1573_s2 + $0x10] sm:$0xff] }
 0x4ab   :  { %v388_v31 = vpop.permute.xlu1 %387 }
 0x4ac   :  { %v390_v33 = vmul.f32 %v388_v31, %v385_v30  ;;  %v1249_v30 = vpack.c.bf16 %v828_v29, %v827_v28 }
 0x4ae   :  { %v395_v34 = vadd.f32 %v394_v32, %v390_v33 }
 0x4b0   :  { %408 = vrot.lane.b32.xlu1 %v395_v34, %s1287_s9 }
 0x522   :  { %v409_v39 = vpop.permute.xlu1 %408 }
 0x523   :  { %997 = vst.msk [vmem:[%s1572_s3 + $0x2] sm:$0x1] %vm994_vm3, %v409_v39  ;;  %1135 = vmatmul.mubr.msk.f32.vlgmr.msra.gmra.mrb[4].mxu1 %vm105_vm1, %v409_v39 }
 0x524   :  { %1156 = vmatprep.mubr.msk.f32.mxu1 %vm1284_vm0, %v1285_v8  ;;  %1235 = vmatpush3.bf16.msra.mxu1 %v1234_v56 }
 0x525   :  { %1236 = vmatprep.subr.bf16.mxu1 %v1283_v0 }
 0x528   :  { %1238 = vmatpush3.bf16.msra.mxu1 %v1237_v58 }
 0x529   :  { %1164 = vmatprep.subr.mxu1 %v1285_v8 }
 0x5f6   :  { %v478_v41 = vpop.f32.mrb[4].mxu1 }
 0x5f7   :  { %v479_v42 = vadd.f32 %v478_v41, %v405_v40  ;;  %v1136_v43 = vpop.f32.mrb[5].mxu1 }
 0x5f9   :  { %v555_v44 = vadd.f32 %v552_v37, %v479_v42 }
 0x5fb   :  { %v1014_v45 = vmul.f32 -1.442695, %v555_v44 }
 0x5fd   :  { %1269 = vpow2.f32 %v1014_v45 }
 0x607   :  { %v1270_v46 = vpop.eup %1269 }
 0x608   :  { %v559_v47 = vadd.f32 1.0, %v1270_v46 }
 0x60a   :  { %1271 = vrcp.f32 %v559_v47 }
 0x614   :  { %v1272_v49 = vpop.eup %1271 }
 0x615   :  { %v566_v50 = vmul.f32 %v1272_v49, %v564_v48  ;;  %v573_v62 = vsub.f32 1.0, %v1272_v49 }
 0x617   :  { %568 = vrot.lane.b32.xlu1 %v566_v50, %s1286_s15 }
 0x61b   :  { %579 = vrot.lane.b32.xlu1 %v396_v27, %s1288_s12 }
 0x689   :  { %v569_v51 = vpop.permute.xlu1 %568 }
 0x68a   :  { %v571_v52 = vadd.f32 %v569_v51, %v479_v42 }
 0x68c   :  { %1273 = vtanh.f32 %v571_v52 }
 0x68d   :  { %v580_v61 = vpop.permute.xlu1 %579 }
 0x68e   :  { %v582_v1 = vmul.f32 %v1272_v49, %v580_v61 }
 0x696   :  { %v1274_v59 = vpop.eup %1273 }
 0x697   :  { %575 = vrot.lane.b32.xlu0 %v1274_v59, %s1287_s9 }
 0x709   :  { %v576_v63 = vpop.permute.xlu0 %575 }
 0x70a   :  { %v578_v2 = vmul.f32 %v576_v63, %v573_v62 }
 0x70c   :  { %v583_v3 = vadd.f32 %v582_v1, %v578_v2 }
 0x70e   :  { %589 = vrot.lane.b32.xlu0 %v583_v3, %s1287_s9 }
 0x780   :  { %v590_v4 = vpop.permute.xlu0 %589 }
 0x781   :  { %999 = vst.msk [vmem:[%s1572_s3 + $0x3] sm:$0x1] %vm994_vm3, %v590_v4  ;;  %1157 = vmatmul.mubr.msk.f32.vlgmr.msra.gmra.mrb[6].mxu1 %vm105_vm1, %v590_v4 }
 0x782   :  { %1165 = vmatpush3.msra.mxu1 %v14_v60  ;;  %1166 = vmatprep.mubr.msk.f32.mxu1 %vm1284_vm0, %v1285_v8 }
 0x783   :  { %1245 = vmatprep.subr.bf16.mxu1 %v1283_v0 }
 0x854   :  { %v659_v5 = vpop.f32.mrb[6].mxu1 }
 0x855   :  { %v1158_v6 = vpop.f32.mrb[7].mxu1  ;;  %1162 = vmatmul.mubr.msk.f32.vlgmr.msra.gmra.mrb[6].mxu0 %vm105_vm1, %v659_v5 }
 0x856   :  { %1177 = vmatprep.mubr.msk.f32.mxu0 %vm1284_vm0, %v1285_v8  ;;  %1241 = vmatpush3.bf16.msra.mxu0 %v1240_v19 }
 0x857   :  { %1242 = vmatprep.subr.bf16.mxu0 %v1283_v0 }
 0x85a   :  { %1244 = vmatpush3.bf16.msra.mxu0 %v1243_v21 }
 0x928   :  { %v735_v7 = vpop.f32.mrb[6].mxu0 }
 0x929   :  { %v1163_v9 = vpop.f32.mrb[7].mxu0  ;;  %v740_v10 = vsel %vm739_vm4, %v735_v7, -inf }
 0x92a   :  { %741 = vmax.xlane.f32.xlu1 %v740_v10 }
 0x9b7   :  { %v742_v11 = vpop.xlane.xlu1 %741 }
 0x9b8   :  { %v743_v12 = vsub.f32 %v735_v7, %v742_v11 }
 0x9ba   :  { %v744_v13 = vmul.f32 1.442695, %v743_v12 }
 0x9bc   :  { %1275 = vpow2.f32 %v744_v13 }
 0x9c6   :  { %v1276_v14 = vpop.eup %1275 }
 0x9c7   :  { %v746_v15 = vsel %vm739_vm4, %v1276_v14, 0.0 }
 0x9c8   :  { %747 = vadd.xlane.f32.xlu0 %v746_v15 }
 0xa55   :  { %v748_v22 = vpop.xlane.xlu0 %747 }
 0xa56   :  { %1277 = vrcp.f32 %v748_v22 }
 0xa60   :  { %v1278_v25 = vpop.eup %1277 }
 0xa61   :  { %v750_v27 = vmul.f32 %v1278_v25, %v1276_v14 }
 0xa63   :  { %1001 = vst.msk [vmem:[%s1572_s3 + $0x5] sm:$0x1] %vm739_vm4, %v750_v27  ;;  %1167 = vmatmul.mubr.msk.f32.vlgmr.msra.gmra.mrb[8].mxu1 %vm751_vm5, %v750_v27 }
 0xa64   :  { %1247 = vmatpush3.bf16.msra.mxu1 %v1246_v26  ;;  %1188 = vmatprep.mubr.msk.f32.mxu1 %vm1284_vm0, %v1285_v8  ;;  %v976_v8 = vld [vmem:[%s1573_s2 + $0x40] sm:$0x1] }
 0xa65   :  { %1248 = vmatprep.subr.bf16.mxu1 %v1283_v0 }
 0xa68   :  { %1250 = vmatpush3.bf16.msra.mxu1 %v1249_v30 }
 0xa6b   :  { %1189 = vmatmul.mubr.msk.f32.vlgmr.msra.gmra.mrb[10].mxu1 %vm105_vm1, %v590_v4 }
 0xb36   :  { %v821_v31 = vpop.f32.mrb[8].mxu1 }
 0xb37   :  { %1000 = vst.msk [vmem:[%s1572_s3 + $0x4] sm:$0x1] %vm994_vm3, %v821_v31  ;;  %v1168_v32 = vpop.f32.mrb[9].mxu1  ;;  %1178 = vmatmul.mubr.msk.f32.vlgmr.msra.gmra.mrb[8].mxu0 %vm105_vm1, %v821_v31 }
 0xb3e   :  { %v972_v33 = vpop.f32.mrb[10].mxu1 }
 0xb3f   :  { %v1190_v34 = vpop.f32.mrb[11].mxu1 }
 0xc0a   :  { %v902_v35 = vpop.f32.mrb[8].mxu0 }
 0xc0b   :  { %v973_v0 = vadd.f32 %v972_v33, %v902_v35  ;;  %v1179_v36 = vpop.f32.mrb[9].mxu0 }
 0xc0d   :  { %v977_v37 = vadd.f32 %v976_v8, %v973_v0 }
 0xc0f   :  { %v979_v38 = vsel %vm978_vm6, %v977_v37, -inf }
 0xc10   :  { %980 = vmax.xlane.f32.xlu0 %v979_v38 }
 0xc9d   :  { %v981_v39 = vpop.xlane.xlu0 %980 }
 0xc9e   :  { %v982_v40 = vsub.f32 %v977_v37, %v981_v39 }
 0xca0   :  { %v983_v41 = vmul.f32 1.442695, %v982_v40 }
 0xca2   :  { %1279 = vpow2.f32 %v983_v41 }
 0xcac   :  { %v1280_v42 = vpop.eup %1279 }
 0xcad   :  { %v985_v43 = vsel %vm978_vm6, %v1280_v42, 0.0 }
 0xcae   :  { %986 = vadd.xlane.f32.xlu1 %v985_v43 }
 0xd3b   :  { %v987_v44 = vpop.xlane.xlu1 %986 }
 0xd3c   :  { %1281 = vlog2.f32 %v987_v44 }
 0xd46   :  { %v1282_v45 = vpop.eup %1281 }
 0xd47   :  { %v989_v46 = vmul.f32 0.6931472, %v1282_v45 }
 0xd49   :  { %v990_v47 = vsub.f32 %v982_v40, %v989_v46 }
 0xd4b   :  { %992 = vst.msk [vmem:[%s1572_s3] sm:$0x1] %vm978_vm6, %v990_v47 }

</bundles_post_ra>
